<compile_context>
chip_gen: v7x
topology: tpu7x:2x2x1
jax: 0.10.0
libtpu: 0.0.40
codegen_flags: <defaults>
</compile_context>

<pallas_src>
import jax
import jax.numpy as jnp
import numpy as np
from jax.experimental import pallas as pl
from jax.experimental.pallas import tpu as pltpu


# irreps_head given as a tuple of (multiplicity, ir.dim) pairs, e.g.
# "8x0e + 4x1e" -> ((8, 1), (4, 3)).  D = 8*1 + 4*3 = 20.
IRREPS_HEAD = ((8, 1), (4, 3))


def _head_indices(irreps_head):
    """Replicates AttnHeads2Vec.__init__: list of (start, end) per irrep."""
    idxs, start = [], 0
    for mul, ir_dim in irreps_head:
        idxs.append((start, start + mul * ir_dim))
        start += mul * ir_dim
    return idxs, start


def _perm_matrix(head_indices, num_heads, feat_dim, dtype):
    """One-hot [HD, HD] matrix P such that (x2 @ P)[:, j] == x2[:, perm[j]]."""
    hd = num_heads * feat_dim
    cols = []
    for (s, e) in head_indices:          # segment-major ...
        for h in range(num_heads):       # ... then head-major ...
            for o in range(s, e):        # ... then offset within segment.
                cols.append(h * feat_dim + o)
    assert len(cols) == hd and len(set(cols)) == hd
    p = np.zeros((hd, hd), dtype=np.float32)
    p[np.asarray(cols), np.arange(hd)] = 1.0   # exactly representable in bf16 too
    return jnp.asarray(p, dtype=dtype)


def _permute_kernel(x_ref, p_ref, o_ref):
    # One-hot permutation matmul on the MXU.  precision=HIGHEST -> fp32
    # contract precision, so each output element is x * 1.0 (no relayouts,
    # no precision downcast for f32 inputs).
    out = jnp.dot(x_ref[...], p_ref[...],
                  precision=jax.lax.Precision.HIGHEST,
                  preferred_element_type=jnp.float32)
    o_ref[...] = out.astype(o_ref.dtype)


def _vmem_capacity_bytes():
    try:
        return int(pltpu.get_tpu_info().vmem_capacity_bytes)
    except Exception:
        return 64 * 1024 * 1024   # v7x has the smallest VMEM; safe fallback


def attn_heads_2_vec(x, irreps_head=IRREPS_HEAD, tile_bytes=8 * 1024 * 1024):
    """Pallas wrapper: [N, H, D] -> [N, H * D] with equiformer head packing."""
    N, H, D = x.shape
    head_indices, total = _head_indices(irreps_head)
    assert total == D, f"irreps_head dim {total} != input last dim {D}"
    HD = H * D
    itemsize = jnp.dtype(x.dtype).itemsize
    sub = {4: 8, 2: 16, 1: 32}.get(itemsize, 8)   # dtype-aware sublane multiple

    x2 = x.reshape(N, HD)                          # free row-major view
    p = _perm_matrix(head_indices, H, D, x.dtype)  # [HD, HD] one-hot

    # --- tile sizing --------------------------------------------------------
    cap = _vmem_capacity_bytes()
    # in + out double-buffered + matmul scratch must fit comfortably in VMEM.
    tile_bytes = max(sub * HD * itemsize, min(tile_bytes, cap // 10))
    rows_budget = max(sub, tile_bytes // (HD * itemsize))
    if N <= rows_budget:
        if N >= 2 * sub:
            # Split so the "parallel" grid has >= 2 steps (v7x has two
            # TensorCores; the extra grid step is ~free on v5e/v6e).
            block_rows = ((N + 1) // 2 + sub - 1) // sub * sub
        else:
            block_rows = N        # single full-extent block (allowed by (8,128) rule)
    else:
        block_rows = (rows_budget // sub) * sub
    num_tiles = pl.cdiv(N, block_rows)

    tile_actual = block_rows * HD * itemsize
    vmem_limit = int(min(cap * 3 // 4, 6 * tile_actual + 8 * 1024 * 1024))
    vmem_limit = max(vmem_limit, 16 * 1024 * 1024)

    return pl.pallas_call(
        _permute_kernel,
        out_shape=jax.ShapeDtypeStruct((N, HD), x.dtype),
        grid=(num_tiles,),
        in_specs=[
            # Full-width row tiles: HBM DMA stays contiguous, ragged N handled
            # by the masked partial last block.
            pl.BlockSpec((block_rows, HD), lambda i: (i, 0)),
            # Permutation matrix: constant block index -> fetched once, stays
            # resident in VMEM for the whole grid.
            pl.BlockSpec((HD, HD), lambda i: (0, 0)),
        ],
        out_specs=pl.BlockSpec((block_rows, HD), lambda i: (i, 0)),
        compiler_params=pltpu.CompilerParams(
            dimension_semantics=("parallel",),
            vmem_limit_bytes=vmem_limit),
        cost_estimate=pl.CostEstimate(
            flops=2 * N * HD * HD,
            transcendentals=0,
            bytes_accessed=(2 * N * HD + HD * HD) * itemsize),
    )(x2, p)


def attn_heads_2_vec_ref(x, irreps_head=IRREPS_HEAD):
    """Pure-JAX reference mirroring the PyTorch forward exactly."""
    N = x.shape[0]
    head_indices, _ = _head_indices(irreps_head)
    out = []
    for (s, e) in head_indices:
        out.append(x[:, :, s:e].reshape(N, -1))
    return jnp.concatenate(out, axis=1)


if __name__ == "__main__":
    _, D = _head_indices(IRREPS_HEAD)
    H = 4
    k1, k2, k3, k4 = jax.random.split(jax.random.PRNGKey(0), 4)

    # Tolerances: with precision=HIGHEST the one-hot matmul is expected to be
    # (bit-)exact; the small slack only tolerates implementation variation in
    # the fp32 contract passes, while still catching any wrong permutation or
    # a bf16-level precision downcast.
    RTOL, ATOL = 1e-4, 1e-6

    # Test 1: f32, N=16 -> 2-step "parallel" grid (both v7x cores get work).
    x1 = jax.random.normal(k1, (16, H, D), dtype=jnp.float32)
    o1 = jax.block_until_ready(attn_heads_2_vec(x1))
    r1 = attn_heads_2_vec_ref(x1)
    assert o1.shape == (16, H * D), o1.shape
    assert jnp.allclose(o1, r1, rtol=RTOL, atol=ATOL), "mismatch (N=16)"

    # Test 2: ragged N=13 -> single full-extent block; no padding anywhere.
    x2 = jax.random.normal(k2, (13, H, D), dtype=jnp.float32)
    o2 = jax.block_until_ready(attn_heads_2_vec(x2))
    r2 = attn_heads_2_vec_ref(x2)
    assert o2.shape == (13, H * D), o2.shape
    assert jnp.allclose(o2, r2, rtol=RTOL, atol=ATOL), "mismatch (N=13)"

    # Test 3: N=200 with a tiny tile budget -> 4-step grid with a masked
    # partial last block.
    x3 = jax.random.normal(k3, (200, H, D), dtype=jnp.float32)
    o3 = jax.block_until_ready(attn_heads_2_vec(x3, tile_bytes=64 * H * D * 4))
    r3 = attn_heads_2_vec_ref(x3)
    assert o3.shape == (200, H * D), o3.shape
    assert jnp.allclose(o3, r3, rtol=RTOL, atol=ATOL), "mismatch (N=200)"

    # Test 4: bf16 path (16-row sublane rounding; one-hot bf16 matmul is exact).
    x4 = jax.random.normal(k4, (40, H, D), dtype=jnp.float32).astype(jnp.bfloat16)
    o4 = jax.block_until_ready(attn_heads_2_vec(x4))
    r4 = attn_heads_2_vec_ref(x4)
    assert o4.shape == (40, H * D), o4.shape
    assert jnp.allclose(o4.astype(jnp.float32), r4.astype(jnp.float32),
                        rtol=RTOL, atol=ATOL), "mismatch (bf16, N=40)"

    print("KERNEL_OK")
</pallas_src>

<mosaic_0001>
module attributes {stable_mosaic.version = 11 : i64} {
  func.func @_permute_kernel(%arg0: i32, %arg1: memref<8x80xf32, #tpu.memory_space<vmem>>, %arg2: memref<80x80xf32, #tpu.memory_space<vmem>>, %arg3: memref<8x80xf32, #tpu.memory_space<vmem>>) attributes {dimension_semantics = [#tpu.dimension_semantics<parallel>], iteration_bounds = array<i64: 2>, scalar_prefetch = 0 : i64, scratch_operands = 0 : i64, tpu.core_type = #tpu.core_type<tc>, window_params = [{transform_indices = @transform_0, window_bounds = array<i64: 8, 80>}, {pipeline_mode = #tpu.pipeline_mode<synchronous>, transform_indices = @transform_1, window_bounds = array<i64: 80, 80>}, {transform_indices = @transform_2, window_bounds = array<i64: 8, 80>}]} {
    %c0 = arith.constant 0 : index
    %c0_0 = arith.constant 0 : index
    %0 = vector.load %arg1[%c0, %c0_0] : memref<8x80xf32, #tpu.memory_space<vmem>>, vector<8x80xf32>
    %c0_1 = arith.constant 0 : index
    %c0_2 = arith.constant 0 : index
    %1 = vector.load %arg2[%c0_1, %c0_2] : memref<80x80xf32, #tpu.memory_space<vmem>>, vector<80x80xf32>
    %cst = arith.constant dense<0.000000e+00> : vector<8x80xf32>
    %2 = tpu.matmul %0, %1, %cst {dimension_numbers = #tpu.dot_dimension_numbers<[1], [0], [0], [1], [0, 0, 1, 1], [], []>, precision = #tpu.contract_precision<fp32>} : vector<8x80xf32>, vector<80x80xf32>, vector<8x80xf32> -> vector<8x80xf32>
    %c0_3 = arith.constant 0 : index
    %c0_4 = arith.constant 0 : index
    %3 = vector.load %arg3[%c0_3, %c0_4] : memref<8x80xf32, #tpu.memory_space<vmem>>, vector<8x80xf32>
    tpu.vector_store %arg3[%c0_3, %c0_4], %2 {strides = array<i32>} : memref<8x80xf32, #tpu.memory_space<vmem>>, vector<8x80xf32>,
    return
  }
  func.func @transform_0(%arg0: i32) -> (i32, i32) {
    %c0_i32 = arith.constant 0 : i32
    %c0_i32_0 = arith.constant 0 : i32
    return %arg0, %c0_i32 : i32, i32
  }
  func.func @transform_1(%arg0: i32) -> (i32, i32) {
    %c0_i32 = arith.constant 0 : i32
    %c0_i32_0 = arith.constant 0 : i32
    %c0_i32_1 = arith.constant 0 : i32
    return %c0_i32, %c0_i32_0 : i32, i32
  }
  func.func @transform_2(%arg0: i32) -> (i32, i32) {
    %c0_i32 = arith.constant 0 : i32
    %c0_i32_0 = arith.constant 0 : i32
    return %arg0, %c0_i32 : i32, i32
  }
}

</mosaic_0001>

<bundles_post_ra>
// kernel: tpu_custom_call.1
= control target key start
LH: loop header
LB: loop body
LE: loop exit
PB: predicated region body
PF: predicated region fallthrough
CT: control target
= control target key end

     0   :  { %7 = vsyncpa [#allocation3], 0  ;;  %s1709_s0 = inlined_call_operand.hbm [shape: f32[16,80], index: 0, kind: input, shape index: {}]   ;;  %s1710_s1 = inlined_call_operand.hbm [shape: f32[80,80], index: 1, kind: input, shape index: {}]   ;;  %s1711_s2 = inlined_call_operand.hbm [shape: f32[16,80], index: 2, kind: output, shape index: {}]  }
   0x1   :  { %9 = vsyncpa [#allocation3 + $0x1], 0 }
   0x2   :  { %10 = vsyncpa [#allocation6], 0 }
   0x3   :  { %11 = vsyncpa [#allocation4], 0 }
   0x4   :  { %13 = vsyncpa [#allocation4 + $0x1], 0  ;;  %s1379_s9 = smov 0   ;;  %s1381_s10 = smov 0  }
   0x5   :  { %s1383_s11 = smov 0   ;;  %s1385_s12 = smov 0  }
   0x6 LB: > { %s1400_s13 = sadd.s32 4294967295, %s1354_s12   ;;  %s847_s14 = sadd.s32 4294967294, %s1354_s12   ;;  %s1354_s12 = sphi %s1385_s12, %s1731_s12   ;;  %s1350_s11 = sphi %s1383_s11, %s1730_s11   ;;  %s1346_s10 = sphi %s1381_s10, %s1729_s10   ;;  %s1342_s9 = sphi %s1379_s9, %s1728_s9  }
   0x7   : > { %p39_p0 = scmp.ne.s32.totalorder %s1346_s10, %s1342_s9  ;;  %p1712_p1 = scmp.eq.s32.totalorder %s1400_s13, 0 }
   0x8   : > { %p90_p3 = scmp.eq.s32.totalorder %s847_s14, 1  ;;  %p848_p5 = scmp.ge.s32.totalorder %s1354_s12, 1 }
   0x9   : > { %p1409_p4 = por %p1712_p1, %p39_p0  ;;  %p97_p7 = scmp.lt.s32.totalorder %s1354_s12, 3 }
   0xa   : > { %p1414_p6 = por %p90_p3, %p39_p0  ;;  %s1356_s18 = smov [#allocation5]  }
   0xb   : > { %s1715_s15 = scalar_select %p1409_p4, 1, 0 }
   0xc   : > { %s1716_s16 = scalar_select %p1414_p6, 1, 0 }
   0xd   : > { %p1419_p8 = pnand %p848_p5, %p97_p7  ;;  %s109_s19 = sshll.u32 %s1356_s18, 4  ;;  %s1423_s19 = int_to_ptr.vmem [resolvable:$true] %s109_s19 }
   0xe   : > { %s1435_s21 = sadd.s32 1, %s1354_s12   ;;  %s26_s22 = sadd.s32 1, %s1350_s11 }
   0xf   : > { %s1717_s17 = scalar_select %p1419_p8, 1, 0 }
  0x10   : > { %p1172_p9 = pneg %p1419_p8  ;;  %s23_s23 = ssub.s32 %s1354_s12, %s1435_s21 }
  0x11   : > { %s1226_s26 = scalar_lea.hbm %s1710_s1, 1280 }
  0x12   : > { %p1430_p11 = pnand %p1172_p9, %p1712_p1  ;;  %p1227_p12 = scmp.ne.s32.totalorder %s1710_s1, %s1226_s26 }
  0x13   : > { %p1233_p5 = scmp.lt.u32.totalorder %s1226_s26, %s1710_s1 }
  0x14   : > { %p1228_p13 = pneg %p1430_p11 }
  0x16   : > { %p1229_p0 = pnand %p1228_p13, %p1227_p12 }
  0x18   : > { %p1230_p3 = pneg %p1229_p0 }
  0x1a   : > { %p1235_p7 = pnand %p1233_p5, %p1230_p3 }
  0x1c   : > { %1238 = shalt.err (!%p1235_p7)
}
  0x1d   : > { %s1239_s3 = scalar_lea.vmem %s1423_s19, 1280  ;;  %p1247_p2 = scmp.lt.s32.totalorder %s1423_s19, %s1423_s19 }
  0x1e   : > { %p1240_p9 = scmp.ne.s32.totalorder %s1423_s19, %s1239_s3  ;;  %p1248_p6 = scmp.lt.s32.totalorder %s1239_s3, %s1239_s3 }
  0x20   : > { %p1242_p10 = pnand %p1240_p9, %p1228_p13  ;;  %p1249_p4 = por %p1248_p6, %p1247_p2 }
  0x22   : > { %p1243_p1 = pneg %p1242_p10 }
  0x24   : > { %p1250_p8 = pnand %p1249_p4, %p1243_p1 }
  0x26   : > { %1253 = shalt.err (!%p1250_p8)
}
  0x27   : > { %s1357_s4 = smov 128   ;;  %s1358_s5 = smov 8  }
  0x28   : > { %1175 = dma.hbm_to_vmem [thread:$0]  (!%p1430_p11), %s1710_s1, 1280, %s1423_s19, [#allocation6], %s1357_s4, %s1357_s4, %s1358_s5  }
  0x29   : > { %p24_p2 = scmp.eq.s32.totalorder %s23_s23, 0  ;;  %p33_p1 = scmp.ne.s32.totalorder %s1350_s11, %s1346_s10 }
  0x2a   : > { %p34_p4 = scmp.eq.s32.totalorder %s1354_s12, 0  ;;  %p1185_p6 = scmp.lt.s32.totalorder %s1354_s12, 2 }
  0x2b   : > { %s1466_s8 = scalar_select %p24_p2, %s1350_s11, %s26_s22  }
  0x2c   : > { %p35_p8 = por %p34_p4, %p33_p1  ;;  %p1719_p10 = scmp.eq.s32.totalorder %s1400_s13, 1 }
  0x2d   : > { %s123_s18 = sand.u32 1, %s1350_s11   ;;  %s852_s24 = sshll.u32 %s1354_s12, 7 }
  0x2e   : > { %p1470_p12 = por %p1719_p10, %p33_p1  ;;  %s851_s25 = sshll.u32 %s123_s18, 3 }
  0x2f   : > { %s1479_s27 = scalar_lea.hbm %s1709_s0, %s852_s24  ;;  %s127_s19 = scalar_lea.vmem [#allocation2], %s851_s25 }
  0x30   : > { %s134_s22 = sshll.u32 %s127_s19, 4  ;;  %p1481_p11 = pnand %p1185_p6, %p35_p8  ;;  %s1485_s22 = int_to_ptr.vmem [resolvable:$true] %s134_s22 }
  0x31   : > { %s124_s28 = scalar_lea.sflag [#allocation3], %s123_s18  ;;  %s1254_s29 = scalar_lea.hbm %s1479_s27, 128 }
  0x32   : > { %p1255_p13 = scmp.ne.s32.totalorder %s1479_s27, %s1254_s29  ;;  %p1256_p0 = pneg %p1481_p11 }
  0x33   : > { %s1259_s4 = scalar_lea.hbm %s1709_s0, 256  ;;  %p1260_p7 = scmp.lt.u32.totalorder %s1479_s27, %s1709_s0 }
  0x34   : > { %p1257_p3 = pnand %p1256_p0, %p1255_p13  ;;  %p1261_p9 = scmp.lt.u32.totalorder %s1259_s4, %s1254_s29 }
  0x35   : > { %p1263_p1 = scmp.lt.u32.totalorder %s1254_s29, %s1479_s27 }
  0x36   : > { %p1258_p5 = pneg %p1257_p3  ;;  %p1262_p2 = por %p1261_p9, %p1260_p7 }
  0x38   : > { %p1264_p4 = por %p1263_p1, %p1262_p2 }
  0x3a   : > { %p1265_p6 = pnand %p1264_p4, %p1258_p5 }
  0x3c   : > { %1268 = shalt.err (!%p1265_p6)
}
  0x3d   : > { %s1269_s7 = scalar_lea.vmem %s1485_s22, 128  ;;  %s1359_s18 = smov [#allocation2]  }
  0x3e   : > { %p1270_p8 = scmp.ne.s32.totalorder %s1485_s22, %s1269_s7  ;;  %s1274_s24 = sshll.u32 %s1359_s18, 4  ;;  %s1275_s24 = int_to_ptr.vmem [resolvable:$false] %s1274_s24 }
  0x3f   : > { %s1276_s25 = scalar_lea.vmem %s1275_s24, 256  ;;  %p1277_p3 = scmp.lt.s32.totalorder %s1485_s22, %s1275_s24 }
  0x40   : > { %p1272_p10 = pnand %p1270_p8, %p1256_p0  ;;  %p1278_p7 = scmp.lt.s32.totalorder %s1276_s25, %s1269_s7 }
  0x42   : > { %p1273_p13 = pneg %p1272_p10  ;;  %p1279_p9 = por %p1278_p7, %p1277_p3 }
  0x44   : > { %p1280_p2 = pnand %p1279_p9, %p1273_p13 }
  0x46   : > { %1283 = shalt.err (!%p1280_p2)
}
  0x47   : > { %1179 = dma.hbm_to_vmem [thread:$0]  (!%p1481_p11), %s1479_s27, 128, %s1485_s22, %s124_s28  }
  0x48   : > { %p1722_p5 = scmp.ne.s32.totalorder %s1717_s17, 0 }
  0x49   : > { %s1515_s20 = sand.u32 (!%p1722_p5), 1, %s1346_s10   ;;  %p1723_p0 = scmp.ne.s32.totalorder (!%p1722_p5), %s1715_s15, 0 }
  0x4a   : > { %143 = sbr.rel (%p1722_p5) target bundleno = 377 (0x179), region = 28  ;;  %s854_s26 = sshll.u32 (!%p1722_p5), %s1515_s20, 3 }
  0x4b   : > { %s146_s19 = scalar_lea.sflag (!%p1722_p5), [#allocation3], %s1515_s20  ;;  %s149_s29 = scalar_lea.vmem (!%p1722_p5), [#allocation2], %s854_s26 }
  0x51   : > { %1329 = dma.done.wait (%p1723_p0), %s146_s19, 128  }
  0x52   : > { %1331 = vsyncadd (%p1723_p0), %s146_s19, 4294967168  ;;  %p1724_p11 = scmp.eq.s32.totalorder %s1400_s13, 0 }
  0x54   : > { %1333 = dma.done.wait (%p1724_p11), [#allocation6], 1280   ;;  %p1725_p1 = pmov %p1724_p11 }
  0x55   : > { %v1360_v0 = vmov 0.0|0.0   ;;  %vm1361_vm0 = vmmov 0   ;;  %v1362_v1 = vmov 0.0   ;;  %v175_v2 = vld [vmem:[#allocation5] sm:$0xff]  ;;  %v176_v3 = vld [vmem:[#allocation5 + $0x8] sm:$0xff]  ;;  %v177_v4 = vld [vmem:[#allocation5 + $0x10] sm:$0xff] }
  0x56   : > { %1335 = vsyncadd (%p1725_p1), [#allocation6], 4294966016  ;;  %1065 = vmatprep.subr.bf16.mxu1 %v1360_v0  ;;  %1110 = vmatprep.subr.bf16.mxu0 %v1360_v0  ;;  %v190_v5 = vand.u32 4294901760, %v175_v2  ;;  %v193_v6 = vand.u32 4294901760, %v176_v3  ;;  %v178_v7 = vld [vmem:[#allocation5 + $0x18] sm:$0xff]  ;;  %v196_v8 = vand.u32 4294901760, %v177_v4 }
  0x57   : > { %947 = vmatprep.mubr.msk.f32.mxu1 %vm1361_vm0, %v1362_v1  ;;  %1016 = vmatprep.mubr.msk.f32.mxu0 %vm1361_vm0, %v1362_v1  ;;  %v179_v9 = vld [vmem:[#allocation5 + $0x20] sm:$0xff]  ;;  %v180_v10 = vld [vmem:[#allocation5 + $0x28] sm:$0xff]  ;;  %v199_v11 = vand.u32 4294901760, %v178_v7  ;;  %v174_v13 = vld [vmem:[%s149_s29] sm:$0xff]  ;;  %vm185_vm1 = vcmask 654336   ;;  %s858_s15 = sshll.u32 %s1400_s13, 7 }
  0x58   : > { %v1535_v12 = vpack.c.bf16 %v193_v6, %v190_v5  ;;  %v202_v14 = vand.u32 4294901760, %v179_v9  ;;  %v205_v15 = vand.u32 4294901760, %v180_v10  ;;  %v1538_v16 = vsub.f32 %v175_v2, %v190_v5  ;;  %v181_v19 = vld [vmem:[#allocation5 + $0x30] sm:$0xff]  ;;  %v182_v20 = vld [vmem:[#allocation5 + $0x38] sm:$0xff]  ;;  %v183_v28 = vld [vmem:[#allocation5 + $0x40] sm:$0xff]  ;;  %s173_s17 = scalar_lea.vmem [#allocation7], %s854_s26  ;;  %s1664_s28 = scalar_lea.hbm %s1711_s2, %s858_s15 }
  0x59   : > { %v1540_v17 = vsub.f32 %v176_v3, %v193_v6  ;;  %v1543_v18 = vpack.c.bf16 %v199_v11, %v196_v8  ;;  %v187_v21 = vsel %vm185_vm1, %v174_v13, 0  ;;  %v1548_v22 = vsub.f32 %v177_v4, %v196_v8  ;;  %v184_v31 = vld [vmem:[#allocation5 + $0x48] sm:$0xff]  ;;  %s767_s27 = sshll.u32 %s173_s17, 4  ;;  %s754_s13 = scalar_lea.sflag [#allocation4], %s1515_s20  ;;  %s1666_s27 = int_to_ptr.vmem [resolvable:$true] %s767_s27 }
  0x5a   : > { %1067 = vmatpush3.bf16.msra.mxu1 %v1535_v12  ;;  %1112 = vmatpush3.bf16.msra.mxu0 %v1535_v12  ;;  %v1550_v23 = vsub.f32 %v178_v7, %v199_v11  ;;  %v1552_v24 = vpack.c.bf16 %v205_v15, %v202_v14  ;;  %v1554_v25 = vand.u32 4294901760, %v187_v21  ;;  %v208_v26 = vand.u32 4294901760, %v181_v19  ;;  %s1284_s30 = scalar_lea.vmem %s1666_s27, 128  ;;  %s1363_s3 = smov [#allocation7]  }
  0x5b   : > { %1068 = vmatprep.subr.bf16.mxu1 %v1360_v0  ;;  %1113 = vmatprep.subr.bf16.mxu0 %v1360_v0  ;;  %v211_v27 = vand.u32 4294901760, %v182_v20  ;;  %v277_v29 = vand.u32 4294901760, %v1538_v16  ;;  %v284_v30 = vand.u32 4294901760, %v1540_v17  ;;  %v1565_v33 = vsub.f32 %v179_v9, %v202_v14  ;;  %p1285_p4 = scmp.ne.s32.totalorder %s1666_s27, %s1284_s30  ;;  %s1288_s4 = sshll.u32 %s1363_s3, 4  ;;  %s1289_s4 = int_to_ptr.vmem [resolvable:$false] %s1288_s4 }
  0x5c   : > { %v1563_v32 = vsub.f32 %v187_v21, %v1554_v25  ;;  %v1567_v34 = vsub.f32 %v180_v10, %v205_v15  ;;  %v214_v35 = vand.u32 4294901760, %v183_v28  ;;  %v291_v37 = vand.u32 4294901760, %v1548_v22  ;;  %s1290_s5 = scalar_lea.vmem %s1289_s4, 256  ;;  %p1291_p10 = scmp.lt.s32.totalorder %s1666_s27, %s1289_s4 }
  0x5d   : > { %v298_v38 = vand.u32 4294901760, %v1550_v23  ;;  %v1574_v39 = vpack.c.bf16 %v211_v27, %v208_v26  ;;  %v217_v40 = vand.u32 4294901760, %v184_v31  ;;  %v278_v41 = vsub.f32 %v1538_v16, %v277_v29  ;;  %p1286_p6 = pnand %p1285_p4, %p1470_p12  ;;  %p1292_p13 = scmp.lt.s32.totalorder %s1290_s5, %s1284_s30 }
  0x5e   : > { %1070 = vmatpush3.bf16.msra.mxu1 %v1543_v18  ;;  %1115 = vmatpush3.bf16.msra.mxu0 %v1543_v18  ;;  %v266_v36 = vand.u32 4294901760, %v1563_v32  ;;  %v285_v42 = vsub.f32 %v1540_v17, %v284_v30  ;;  %v1580_v43 = vsub.f32 %v181_v19, %v208_v26  ;;  %v305_v44 = vand.u32 4294901760, %v1565_v33 }
  0x5f   : > { %1071 = vmatprep.subr.bf16.mxu1 %v1360_v0  ;;  %1116 = vmatprep.subr.bf16.mxu0 %v1360_v0  ;;  %v292_v46 = vsub.f32 %v1548_v22, %v291_v37  ;;  %v299_v47 = vsub.f32 %v1550_v23, %v298_v38  ;;  %v312_v48 = vand.u32 4294901760, %v1567_v34  ;;  %v1588_v49 = vsub.f32 %v182_v20, %v211_v27  ;;  %p1287_p8 = pneg %p1286_p6  ;;  %p1293_p3 = por %p1292_p13, %p1291_p10 }
  0x60   : > { %v267_v45 = vsub.f32 %v1563_v32, %v266_v36  ;;  %v1591_v50 = vpack.c.bf16 %v217_v40, %v214_v35  ;;  %v279_v51 = vand.u32 4294901760, %v278_v41  ;;  %v286_v52 = vand.u32 4294901760, %v285_v42 }
  0x61   : > { %v1595_v53 = vsub.f32 %v183_v28, %v214_v35  ;;  %v1597_v54 = vsub.f32 %v184_v31, %v217_v40  ;;  %v306_v55 = vsub.f32 %v1565_v33, %v305_v44  ;;  %v293_v57 = vand.u32 4294901760, %v292_v46  ;;  %p1294_p7 = pnand %p1293_p3, %p1287_p8 }
  0x62   : > { %1073 = vmatpush3.bf16.msra.mxu1 %v1552_v24  ;;  %1118 = vmatpush3.bf16.msra.mxu0 %v1552_v24  ;;  %v268_v56 = vand.u32 4294901760, %v267_v45  ;;  %v300_v58 = vand.u32 4294901760, %v299_v47  ;;  %v313_v59 = vsub.f32 %v1567_v34, %v312_v48  ;;  %v1081_v60 = vpack.c.bf16 %v286_v52, %v279_v51 }
  0x63   : > { %1074 = vmatprep.subr.bf16.mxu1 %v1360_v0  ;;  %1119 = vmatprep.subr.bf16.mxu0 %v1360_v0  ;;  %v1126_v61 = vpack.c.bf16 %v284_v30, %v277_v29  ;;  %v319_v62 = vand.u32 4294901760, %v1580_v43  ;;  %v326_v63 = vand.u32 4294901760, %v1588_v49  ;;  %v1129_v3 = vpack.c.bf16 %v298_v38, %v291_v37 }
  0x64   : > { %v1084_v2 = vpack.c.bf16 %v300_v58, %v293_v57  ;;  %v307_v4 = vand.u32 4294901760, %v306_v55  ;;  %v314_v5 = vand.u32 4294901760, %v313_v59  ;;  %v333_v8 = vand.u32 4294901760, %v1595_v53 }
  0x65   : > { %v320_v6 = vsub.f32 %v1580_v43, %v319_v62  ;;  %v327_v7 = vsub.f32 %v1588_v49, %v326_v63  ;;  %v340_v9 = vand.u32 4294901760, %v1597_v54  ;;  %v1132_v11 = vpack.c.bf16 %v312_v48, %v305_v44 }
  0x66   : > { %1076 = vmatpush3.bf16.msra.mxu1 %v1574_v39  ;;  %1121 = vmatpush3.bf16.msra.mxu0 %v1574_v39  ;;  %v1087_v10 = vpack.c.bf16 %v314_v5, %v307_v4  ;;  %v334_v15 = vsub.f32 %v1595_v53, %v333_v8  ;;  %v1135_v21 = vpack.c.bf16 %v326_v63, %v319_v62 }
  0x67   : > { %1077 = vmatprep.subr.bf16.mxu1 %v1360_v0  ;;  %1122 = vmatprep.subr.bf16.mxu0 %v1360_v0  ;;  %v321_v13 = vand.u32 4294901760, %v320_v6  ;;  %v328_v14 = vand.u32 4294901760, %v327_v7  ;;  %v341_v19 = vsub.f32 %v1597_v54, %v340_v9  ;;  %v1138_v29 = vpack.c.bf16 %v340_v9, %v333_v8 }
  0x68   : > { %v335_v26 = vand.u32 4294901760, %v334_v15  ;;  %v1096_v30 = vpack.c.bf16 %v1540_v17, %v1538_v16  ;;  %v1099_v31 = vpack.c.bf16 %v1550_v23, %v1548_v22  ;;  %v1102_v16 = vpack.c.bf16 %v1567_v34, %v1565_v33 }
  0x69   : > { %v1090_v20 = vpack.c.bf16 %v328_v14, %v321_v13  ;;  %v342_v27 = vand.u32 4294901760, %v341_v19 }
  0x6a   : > { %1079 = vmatpush3.bf16.msra.mxu1 %v1591_v50  ;;  %1124 = vmatpush3.bf16.msra.mxu0 %v1591_v50 }
  0x6b   : > { %1080 = vmatprep.subr.bf16.mxu1 %v1360_v0  ;;  %1125 = vmatprep.subr.bf16.mxu0 %v1360_v0  ;;  %v1093_v28 = vpack.c.bf16 %v342_v27, %v335_v26 }
  0x6d   : > { %948 = vmatmul.mubr.f32.vlgmr.msra.gmra.mrb[0].mxu1 %v268_v56  ;;  %1017 = vmatmul.mubr.f32.vlgmr.msra.gmra.mrb[0].mxu0 %v266_v36 }
  0x6e   : > { %1082 = vmatpush3.bf16.msra.mxu1 %v1081_v60  ;;  %1127 = vmatpush3.bf16.msra.mxu0 %v1126_v61 }
  0x6f   : > { %1083 = vmatprep.subr.bf16.mxu1 %v1360_v0  ;;  %1128 = vmatprep.subr.bf16.mxu0 %v1360_v0 }
  0x70   : > { %970 = vmatprep.mubr.msk.f32.mxu1 %vm1361_vm0, %v1362_v1  ;;  %1039 = vmatprep.mubr.msk.f32.mxu0 %vm1361_vm0, %v1362_v1 }
  0x72   : > { %1085 = vmatpush3.bf16.msra.mxu1 %v1084_v2  ;;  %1130 = vmatpush3.bf16.msra.mxu0 %v1129_v3 }
  0x73   : > { %1086 = vmatprep.subr.bf16.mxu1 %v1360_v0  ;;  %1131 = vmatprep.subr.bf16.mxu0 %v1360_v0 }
  0x76   : > { %1088 = vmatpush3.bf16.msra.mxu1 %v1087_v10  ;;  %1133 = vmatpush3.bf16.msra.mxu0 %v1132_v11 }
  0x77   : > { %1089 = vmatprep.subr.bf16.mxu1 %v1360_v0  ;;  %1134 = vmatprep.subr.bf16.mxu0 %v1360_v0 }
  0x7a   : > { %1091 = vmatpush3.bf16.msra.mxu1 %v1090_v20  ;;  %1136 = vmatpush3.bf16.msra.mxu0 %v1135_v21 }
  0x7b   : > { %1092 = vmatprep.subr.bf16.mxu1 %v1360_v0  ;;  %1137 = vmatprep.subr.bf16.mxu0 %v1360_v0 }
  0x7e   : > { %1094 = vmatpush3.bf16.msra.mxu1 %v1093_v28  ;;  %1139 = vmatpush3.bf16.msra.mxu0 %v1138_v29 }
  0x7f   : > { %1095 = vmatprep.subr.bf16.mxu1 %v1360_v0  ;;  %1140 = vmatprep.subr.bf16.mxu0 %v1360_v0 }
  0x81   : > { %971 = vmatmul.mubr.f32.vlgmr.msra.gmra.mrb[0].mxu1 %v1554_v25  ;;  %1040 = vmatmul.mubr.f32.vlgmr.msra.gmra.mrb[0].mxu0 %v1554_v25 }
  0x82   : > { %1097 = vmatpush3.bf16.msra.mxu1 %v1096_v30  ;;  %1142 = vmatpush3.bf16.msra.mxu0 %v1535_v12  ;;  %v1105_v12 = vpack.c.bf16 %v1588_v49, %v1580_v43 }
  0x83   : > { %1098 = vmatprep.subr.bf16.mxu1 %v1360_v0  ;;  %1143 = vmatprep.subr.bf16.mxu0 %v1360_v0 }
  0x84   : > { %993 = vmatprep.mubr.msk.f32.mxu1 %vm1361_vm0, %v1362_v1  ;;  %1062 = vmatprep.mubr.msk.f32.mxu0 %vm1361_vm0, %v1362_v1  ;;  %v1108_v1 = vpack.c.bf16 %v1597_v54, %v1595_v53 }
  0x86   : > { %1100 = vmatpush3.bf16.msra.mxu1 %v1099_v31  ;;  %1145 = vmatpush3.bf16.msra.mxu0 %v1543_v18 }
  0x87   : > { %1101 = vmatprep.subr.bf16.mxu1 %v1360_v0  ;;  %1146 = vmatprep.subr.bf16.mxu0 %v1360_v0 }
  0x8a   : > { %1103 = vmatpush3.bf16.msra.mxu1 %v1102_v16  ;;  %1148 = vmatpush3.bf16.msra.mxu0 %v1552_v24 }
  0x8b   : > { %1104 = vmatprep.subr.bf16.mxu1 %v1360_v0  ;;  %1149 = vmatprep.subr.bf16.mxu0 %v1360_v0 }
  0x8e   : > { %1106 = vmatpush3.bf16.msra.mxu1 %v1105_v12  ;;  %1151 = vmatpush3.bf16.msra.mxu0 %v1574_v39 }
  0x8f   : > { %1107 = vmatprep.subr.bf16.mxu1 %v1360_v0  ;;  %1152 = vmatprep.subr.bf16.mxu0 %v1360_v0 }
  0x92   : > { %1109 = vmatpush3.bf16.msra.mxu1 %v1108_v1  ;;  %1154 = vmatpush3.bf16.msra.mxu0 %v1591_v50 }
  0x95   : > { %994 = vmatmul.mubr.f32.vlgmr.msra.gmra.mrb[0].mxu1 %v1563_v32  ;;  %1063 = vmatmul.mubr.f32.vlgmr.msra.gmra.mrb[0].mxu0 %v1554_v25 }
 0x168   : > { %v483_v17 = vpop.f32.mrb[0].mxu1  ;;  %v748_v18 = vpop.f32.mrb[0].mxu0 }
 0x169   : > { %v1155_v22 = vadd.f32 %v748_v18, %v483_v17  ;;  %v995_v23 = vpop.f32.mrb[1].mxu1  ;;  %v1064_v24 = vpop.f32.mrb[1].mxu0 }
 0x16b   : > { %752 = vst.msk [vmem:[%s173_s17] sm:$0xff] %vm185_vm1, %v1155_v22 }
 0x16c   : > { %1297 = shalt.err (!%p1294_p7)
}
 0x16d   : > { %s1298_s6 = scalar_lea.hbm %s1664_s28, 128  ;;  %s1302_s24 = scalar_lea.hbm %s1711_s2, 256 }
 0x16e   : > { %p1299_p9 = scmp.ne.s32.totalorder %s1664_s28, %s1298_s6  ;;  %p1303_p0 = scmp.lt.u32.totalorder %s1664_s28, %s1711_s2 }
 0x16f   : > { %p1304_p11 = scmp.lt.u32.totalorder %s1302_s24, %s1298_s6  ;;  %p1306_p4 = scmp.lt.u32.totalorder %s1298_s6, %s1664_s28 }
 0x170   : > { %p1300_p2 = pnand %p1299_p9, %p1470_p12 }
 0x171   : > { %p1305_p1 = por %p1304_p11, %p1303_p0 }
 0x172   : > { %p1301_p5 = pneg %p1300_p2 }
 0x173   : > { %p1307_p6 = por %p1306_p4, %p1305_p1 }
 0x175   : > { %p1308_p8 = pnand %p1307_p6, %p1301_p5 }
 0x177   : > { %1311 = shalt.err (!%p1308_p8)
}
 0x178   : > { %1170 = dma.vmem_to_hbm [thread:$0]  (%p1470_p12), %s1666_s27, 128, %s1664_s28, %s754_s13  }
 0x179 PF: > { %s779_s26 = sand.u32 1, %s1342_s9   ;;  %p1726_p10 = scmp.ne.s32.totalorder %s1716_s16, 0 }
 0x17a   : > { %p1727_p13 = scmp.ge.s32.totalorder %s1354_s12, 2  ;;  %s780_s19 = scalar_lea.sflag [#allocation4], %s779_s26 }
 0x17c   : > { %p1181_p3 = pnand %p1727_p13, %p1726_p10 }
 0x17e   : > { %1337 = dma.done.wait (!%p1181_p3), %s780_s19, 128  }
 0x17f   : > { %1339 = vsyncadd (!%p1181_p3), %s780_s19, 4294967168  ;;  %p16_p7 = scmp.ge.s32.totalorder %s1435_s21, 4   ;;  %s1728_s9 = smov %s1346_s10 }
 0x180   : > { %s1729_s10 = smov %s1350_s11  ;;  %s1730_s11 = smov %s1466_s8 }
 0x181   : > { %s1731_s12 = smov %s1435_s21  ;;  %18 = sbr.rel (!%p16_p7) target bundleno = 6 (0x6), region = 77 }
 0x188   :  { %785 = vsyncpa [#allocation3], 1 }
 0x189   :  { %787 = vsyncpa [#allocation3 + $0x1], 1 }
 0x18a   :  { %788 = vsyncpa [#allocation6], 1 }
 0x18b   :  { %789 = vsyncpa [#allocation4], 1 }
 0x18c   :  { %791 = vsyncpa [#allocation4 + $0x1], 1 }

</bundles_post_ra>
